<compile_context>
chip_gen: v6e
topology: v6e:2x2x1
jax: 0.10.0
libtpu: 0.0.40
codegen_flags: <defaults>
</compile_context>

<pallas_src>
import jax
import jax.numpy as jnp
from jax.experimental import pallas as pl
from jax.experimental.pallas import tpu as pltpu

# ---- problem sizes (small, TPU-tile friendly) --------------------------------
N_FINE = 256     # fine graph nodes
N_COARSE = 16    # coarse graph nodes (clusters)
C = 128          # feature channels
_MAX_CHUNK = 8   # one f32 sublane group per chunk in the max kernel


# ---- kernels ------------------------------------------------------------------
def _pool_matmul_kernel(w_ref, x_ref, o_ref):
    """out = W @ X.  W is the 0/1 membership matrix for 'sum' and the
    count-normalized membership matrix for 'mean' (scale folded at init)."""
    o_ref[...] = jnp.dot(
        w_ref[...], x_ref[...], preferred_element_type=jnp.float32
    ).astype(o_ref.dtype)


def _pool_max_kernel(assign_ref, x_ref, o_ref):
    """Segment max: chunked running max, single unmasked full-tile store."""
    n_coarse, c_dim = o_ref.shape
    n_fine = x_ref.shape[0]
    chunk = _MAX_CHUNK
    n_chunks = n_fine // chunk
    neg_inf = jnp.float32(-jnp.inf)

    # Per-cluster running max, kept chunk-shaped so the (expensive) sublane
    # reduction happens only once per cluster at the very end.
    acc = [jnp.full((chunk, c_dim), neg_inf, jnp.float32)
           for _ in range(n_coarse)]
    for i in range(n_chunks):                       # static, unrolled at trace time
        lo = i * chunk
        xi = x_ref[lo:lo + chunk, :].astype(jnp.float32)   # each element loaded once
        ai = assign_ref[lo:lo + chunk, :]                   # (chunk, 1) cluster ids
        for cl in range(n_coarse):
            acc[cl] = jnp.maximum(acc[cl], jnp.where(ai == cl, xi, neg_inf))

    rows = [acc[cl].max(axis=0, keepdims=True) for cl in range(n_coarse)]
    o_ref[...] = jnp.concatenate(rows, axis=0).astype(o_ref.dtype)


# ---- pallas_call wrappers ------------------------------------------------------
_VMEM_SPEC = pl.BlockSpec(memory_space=pltpu.MemorySpace.VMEM)
_PARALLEL = pltpu.CompilerParams(dimension_semantics=("parallel",))


def _pallas_pool_matmul(w, features):
    n_coarse, n_fine = w.shape
    if features.ndim == 2:
        c = features.shape[-1]
        # gridless: whole ~150 KiB working set resident in VMEM
        return pl.pallas_call(
            _pool_matmul_kernel,
            out_shape=jax.ShapeDtypeStruct((n_coarse, c), features.dtype),
            in_specs=[_VMEM_SPEC, _VMEM_SPEC],
            out_specs=_VMEM_SPEC,
        )(w, features)
    # batched (B, Nf, C): one grid step per sample, parallel across TCs
    b, _, c = features.shape
    return pl.pallas_call(
        _pool_matmul_kernel,
        out_shape=jax.ShapeDtypeStruct((b, n_coarse, c), features.dtype),
        grid=(b,),
        in_specs=[
            pl.BlockSpec((n_coarse, n_fine), lambda i: (0, 0)),    # resident W
            pl.BlockSpec((None, n_fine, c), lambda i: (i, 0, 0)),
        ],
        out_specs=pl.BlockSpec((None, n_coarse, c), lambda i: (i, 0, 0)),
        compiler_params=_PARALLEL,
    )(w, features)


def _pallas_pool_max(assign_col, features, n_coarse):
    n_fine = assign_col.shape[0]
    assert n_fine % _MAX_CHUNK == 0
    if features.ndim == 2:
        c = features.shape[-1]
        return pl.pallas_call(
            _pool_max_kernel,
            out_shape=jax.ShapeDtypeStruct((n_coarse, c), features.dtype),
            in_specs=[_VMEM_SPEC, _VMEM_SPEC],
            out_specs=_VMEM_SPEC,
        )(assign_col, features)
    b, _, c = features.shape
    return pl.pallas_call(
        _pool_max_kernel,
        out_shape=jax.ShapeDtypeStruct((b, n_coarse, c), features.dtype),
        grid=(b,),
        in_specs=[
            pl.BlockSpec((n_fine, 1), lambda i: (0, 0)),           # resident assign
            pl.BlockSpec((None, n_fine, c), lambda i: (i, 0, 0)),
        ],
        out_specs=pl.BlockSpec((None, n_coarse, c), lambda i: (i, 0, 0)),
        compiler_params=_PARALLEL,
    )(assign_col, features)


# ---- JAX-side module equivalents ------------------------------------------------
class GraphTopology:
    """Fine->coarse cluster topology; `pool` reduces fine node features per cluster."""

    def __init__(self, assign, n_coarse):
        self.assign = jnp.asarray(assign, jnp.int32)
        self.n_coarse = int(n_coarse)
        member = jax.nn.one_hot(self.assign, self.n_coarse, dtype=jnp.float32).T  # (Nc, Nf)
        counts = jnp.clip(member.sum(axis=1, keepdims=True), 1.0)                 # (Nc, 1)
        self._w_sum = member                     # 0/1 membership for 'sum'
        self._w_mean = member / counts           # mean normalization folded in at init
        self._assign_col = self.assign.reshape(-1, 1)   # (Nf, 1) int32 for 'max'

    def pool(self, features, reduce):
        if reduce == "mean":
            return _pallas_pool_matmul(self._w_mean, features)
        if reduce == "sum":
            return _pallas_pool_matmul(self._w_sum, features)
        if reduce == "max":
            return _pallas_pool_max(self._assign_col, features, self.n_coarse)
        raise ValueError(f"unsupported reduce: {reduce}")


class Pool:
    """JAX/Pallas equivalent of brainnet.modules.graph.layers.Pool."""

    def __init__(self, topology, reduce: str) -> None:
        self.topology = topology
        self.reduce = reduce

    def __call__(self, features):
        return self.topology.pool(features, self.reduce)


# ---- demo / correctness check ----------------------------------------------------
if __name__ == "__main__":
    key = jax.random.PRNGKey(0)
    k_feat, k_perm, k_batch = jax.random.split(key, 3)

    # topology: every cluster has exactly N_FINE // N_COARSE members, assignment
    # shuffled so the kernels are exercised on non-contiguous cluster ids.
    base = jnp.arange(N_FINE, dtype=jnp.int32) // (N_FINE // N_COARSE)
    assign = jax.random.permutation(k_perm, base)
    topo = GraphTopology(assign, N_COARSE)

    features = jax.random.normal(k_feat, (N_FINE, C), dtype=jnp.float32)

    # references
    ref_sum = jax.ops.segment_sum(features, assign, num_segments=N_COARSE)
    counts = jax.ops.segment_sum(jnp.ones((N_FINE, 1), jnp.float32), assign,
                                 num_segments=N_COARSE)
    ref_mean = ref_sum / counts
    ref_max = jax.ops.segment_max(features, assign, num_segments=N_COARSE)

    out_mean = jax.block_until_ready(Pool(topo, "mean")(features))
    out_sum = jax.block_until_ready(Pool(topo, "sum")(features))
    out_max = jax.block_until_ready(Pool(topo, "max")(features))

    assert out_mean.shape == (N_COARSE, C)
    assert jnp.allclose(out_mean, ref_mean, atol=1e-5, rtol=1e-5)
    assert jnp.allclose(out_sum, ref_sum, atol=1e-5, rtol=1e-5)
    assert jnp.allclose(out_max, ref_max, atol=1e-5, rtol=1e-5)

    # batched path: grid=(B,) amortizes dispatch and uses both TCs on v7x.
    B = 2
    features_b = jax.random.normal(k_batch, (B, N_FINE, C), dtype=jnp.float32)
    out_mean_b = jax.block_until_ready(Pool(topo, "mean")(features_b))
    out_max_b = jax.block_until_ready(Pool(topo, "max")(features_b))
    ref_mean_b = jnp.stack([
        jax.ops.segment_sum(features_b[b], assign, num_segments=N_COARSE) / counts
        for b in range(B)])
    ref_max_b = jnp.stack([
        jax.ops.segment_max(features_b[b], assign, num_segments=N_COARSE)
        for b in range(B)])
    assert out_mean_b.shape == (B, N_COARSE, C)
    assert jnp.allclose(out_mean_b, ref_mean_b, atol=1e-5, rtol=1e-5)
    assert jnp.allclose(out_max_b, ref_max_b, atol=1e-5, rtol=1e-5)

    print("KERNEL_OK")
</pallas_src>

<mosaic_0001>
module attributes {stable_mosaic.version = 11 : i64} {
  func.func @_pool_matmul_kernel(%arg0: memref<16x256xf32, #tpu.memory_space<vmem>>, %arg1: memref<256x128xf32, #tpu.memory_space<vmem>>, %arg2: memref<16x128xf32, #tpu.memory_space<vmem>>) attributes {dimension_semantics = [], scalar_prefetch = 0 : i64, scratch_operands = 0 : i64, tpu.core_type = #tpu.core_type<tc>} {
    %c0 = arith.constant 0 : index
    %c0_0 = arith.constant 0 : index
    %0 = vector.load %arg0[%c0, %c0_0] : memref<16x256xf32, #tpu.memory_space<vmem>>, vector<16x256xf32>
    %c0_1 = arith.constant 0 : index
    %c0_2 = arith.constant 0 : index
    %1 = vector.load %arg1[%c0_1, %c0_2] : memref<256x128xf32, #tpu.memory_space<vmem>>, vector<256x128xf32>
    %cst = arith.constant dense<0.000000e+00> : vector<16x128xf32>
    %2 = tpu.matmul %0, %1, %cst {dimension_numbers = #tpu.dot_dimension_numbers<[1], [0], [0], [1], [0, 0, 1, 1], [], []>} : vector<16x256xf32>, vector<256x128xf32>, vector<16x128xf32> -> vector<16x128xf32>
    %c0_3 = arith.constant 0 : index
    %c0_4 = arith.constant 0 : index
    %3 = vector.load %arg2[%c0_3, %c0_4] : memref<16x128xf32, #tpu.memory_space<vmem>>, vector<16x128xf32>
    tpu.vector_store %arg2[%c0_3, %c0_4], %2 {strides = array<i32>} : memref<16x128xf32, #tpu.memory_space<vmem>>, vector<16x128xf32>,
    return
  }
}

</mosaic_0001>

<bundles_post_ra>
// kernel: tpu_custom_call.1
= control target key start
LH: loop header
LB: loop body
LE: loop exit
PB: predicated region body
PF: predicated region fallthrough
CT: control target
= control target key end

     0   :  { %7 = vsyncpa [#allocation3], 0  ;;  %s351_s0 = inlined_call_operand.hbm [shape: f32[16,256], index: 0, kind: input, shape index: {}]   ;;  %s352_s1 = inlined_call_operand.hbm [shape: f32[256,128], index: 1, kind: input, shape index: {}]   ;;  %s353_s2 = inlined_call_operand.hbm [shape: f32[16,128], index: 2, kind: output, shape index: {}]  }
   0x1   :  { %8 = vsyncpa [#allocation6], 0 }
   0x2   :  { %9 = vsyncpa [#allocation4], 0  ;;  %s314_s9 = smov [#allocation2]  }
   0x3   :  { %s15_s10 = sshll.u32 %s314_s9, 4  ;;  %s16_s10 = int_to_ptr.vmem [resolvable:$true] %s15_s10 }
   0x4   :  { %s256_s11 = scalar_lea.vmem %s16_s10, 512  ;;  %p261_p1 = scmp.lt.s32.totalorder %s16_s10, %s16_s10 }
   0x5   :  { %p257_p0 = scmp.ne.s32.totalorder %s16_s10, %s256_s11  ;;  %p262_p2 = scmp.lt.s32.totalorder %s256_s11, %s256_s11 }
   0x7   :  { %p263_p3 = por %p262_p2, %p261_p1 }
   0x9   :  { %p264_p4 = pnand %p263_p3, %p257_p0 }
   0xb   :  { %267 = shalt.err (!%p264_p4)
}
   0xc   :  { %s315_s12 = smov 256   ;;  %s316_s13 = smov 16  }
   0xd   :  { %21 = dma.hbm_to_vmem [thread:$0]  %s351_s0, 512, %s16_s10, [#allocation3], %s315_s12, %s315_s12, %s316_s13  }
   0xe   :  { %s317_s16 = smov [#allocation5]  }
   0xf   :  { %s27_s17 = sshll.u32 %s317_s16, 4  ;;  %s28_s17 = int_to_ptr.vmem [resolvable:$true] %s27_s17 }
  0x10   :  { %s276_s18 = scalar_lea.vmem %s28_s17, 4096  ;;  %p281_p6 = scmp.lt.s32.totalorder %s28_s17, %s28_s17 }
  0x11   :  { %p277_p5 = scmp.ne.s32.totalorder %s28_s17, %s276_s18  ;;  %p282_p7 = scmp.lt.s32.totalorder %s276_s18, %s276_s18 }
  0x13   :  { %p283_p8 = por %p282_p7, %p281_p6 }
  0x15   :  { %p284_p9 = pnand %p283_p8, %p277_p5 }
  0x17   :  { %287 = shalt.err (!%p284_p9)
}
  0x18   :  { %s318_s19 = smov 128   ;;  %s319_s20 = smov 8  }
  0x19   :  { %33 = dma.hbm_to_vmem [thread:$0]  %s352_s1, 4096, %s28_s17, [#allocation6], %s318_s19, %s318_s19, %s319_s20  }
  0x1a   :  { %308 = dma.done.wait [#allocation3], 512  }
  0x1b   :  { %309 = vsyncadd [#allocation3], 4294966784 }
  0x1c   :  { %310 = dma.done.wait [#allocation6], 4096  }
  0x1d   :  { %311 = vsyncadd [#allocation6], 4294963200  ;;  %v75_v0 = vld [vmem:[#allocation5 + $0xf8] sm:$0xff]  ;;  %v74_v2 = vld [vmem:[#allocation5 + $0xf0] sm:$0xff]  ;;  %s320_s0 = smov [#allocation7]  }
  0x1e   :  { %v59_v1 = vld [vmem:[#allocation5 + $0x78] sm:$0xff]  ;;  %171 = vmatprep.subr.mxu0 %v75_v0  ;;  %209 = vmatprep.subr.mxu1 %v75_v0  ;;  %v58_v3 = vld [vmem:[#allocation5 + $0x70] sm:$0xff]  ;;  %v73_v4 = vld [vmem:[#allocation5 + $0xe8] sm:$0xff]  ;;  %s158_s1 = sshll.u32 %s320_s0, 4  ;;  %s159_s1 = int_to_ptr.vmem [resolvable:$true] %s158_s1 }
  0x1f   :  { %172 = vmatpush3.msra.mxu0 %v59_v1  ;;  %225 = vmatpush3.msra.mxu1 %v59_v1  ;;  %v57_v5 = vld [vmem:[#allocation5 + $0x68] sm:$0xff]  ;;  %v72_v6 = vld [vmem:[#allocation5 + $0xe0] sm:$0xff]  ;;  %v71_v8 = vld [vmem:[#allocation5 + $0xd8] sm:$0xff]  ;;  %s288_s23 = scalar_lea.vmem %s159_s1, 256  ;;  %p293_p11 = scmp.lt.s32.totalorder %s159_s1, %s159_s1 }
  0x20   :  { %173 = vmatprep.subr.mxu0 %v74_v2  ;;  %210 = vmatprep.subr.mxu1 %v74_v2  ;;  %v56_v7 = vld [vmem:[#allocation5 + $0x60] sm:$0xff]  ;;  %v55_v9 = vld [vmem:[#allocation5 + $0x58] sm:$0xff]  ;;  %v70_v10 = vld [vmem:[#allocation5 + $0xd0] sm:$0xff]  ;;  %p289_p10 = scmp.ne.s32.totalorder %s159_s1, %s288_s23  ;;  %p294_p12 = scmp.lt.s32.totalorder %s288_s23, %s288_s23 }
  0x21   :  { %174 = vmatpush3.msra.mxu0 %v58_v3  ;;  %226 = vmatpush3.msra.mxu1 %v58_v3  ;;  %v54_v11 = vld [vmem:[#allocation5 + $0x50] sm:$0xff]  ;;  %v69_v12 = vld [vmem:[#allocation5 + $0xc8] sm:$0xff]  ;;  %v68_v14 = vld [vmem:[#allocation5 + $0xc0] sm:$0xff] }
  0x22   :  { %175 = vmatprep.subr.mxu0 %v73_v4  ;;  %211 = vmatprep.subr.mxu1 %v73_v4  ;;  %v53_v13 = vld [vmem:[#allocation5 + $0x48] sm:$0xff]  ;;  %v52_v15 = vld [vmem:[#allocation5 + $0x40] sm:$0xff]  ;;  %v67_v16 = vld [vmem:[#allocation5 + $0xb8] sm:$0xff]  ;;  %p295_p13 = por %p294_p12, %p293_p11 }
  0x23   :  { %176 = vmatpush3.msra.mxu0 %v57_v5  ;;  %227 = vmatpush3.msra.mxu1 %v57_v5  ;;  %v51_v17 = vld [vmem:[#allocation5 + $0x38] sm:$0xff]  ;;  %v66_v18 = vld [vmem:[#allocation5 + $0xb0] sm:$0xff]  ;;  %v65_v20 = vld [vmem:[#allocation5 + $0xa8] sm:$0xff] }
  0x24   :  { %177 = vmatprep.subr.mxu0 %v72_v6  ;;  %212 = vmatprep.subr.mxu1 %v72_v6  ;;  %v50_v19 = vld [vmem:[#allocation5 + $0x30] sm:$0xff]  ;;  %v49_v21 = vld [vmem:[#allocation5 + $0x28] sm:$0xff]  ;;  %v64_v22 = vld [vmem:[#allocation5 + $0xa0] sm:$0xff]  ;;  %p296_p0 = pnand %p295_p13, %p289_p10 }
  0x25   :  { %178 = vmatpush3.msra.mxu0 %v56_v7  ;;  %228 = vmatpush3.msra.mxu1 %v56_v7  ;;  %v48_v23 = vld [vmem:[#allocation5 + $0x20] sm:$0xff]  ;;  %v63_v24 = vld [vmem:[#allocation5 + $0x98] sm:$0xff]  ;;  %v62_v26 = vld [vmem:[#allocation5 + $0x90] sm:$0xff] }
  0x26   :  { %179 = vmatprep.subr.mxu0 %v71_v8  ;;  %213 = vmatprep.subr.mxu1 %v71_v8  ;;  %v47_v25 = vld [vmem:[#allocation5 + $0x18] sm:$0xff]  ;;  %v46_v27 = vld [vmem:[#allocation5 + $0x10] sm:$0xff]  ;;  %v61_v28 = vld [vmem:[#allocation5 + $0x88] sm:$0xff] }
  0x27   :  { %180 = vmatpush3.msra.mxu0 %v55_v9  ;;  %229 = vmatpush3.msra.mxu1 %v55_v9  ;;  %v45_v29 = vld [vmem:[#allocation5 + $0x8] sm:$0xff]  ;;  %v60_v30 = vld [vmem:[#allocation5 + $0x80] sm:$0xff]  ;;  %v43_v33 = vld [vmem:[#allocation2 + $0x18] sm:$0xff] }
  0x28   :  { %181 = vmatprep.subr.mxu0 %v70_v10  ;;  %214 = vmatprep.subr.mxu1 %v70_v10  ;;  %v44_v31 = vld [vmem:[#allocation5] sm:$0xff]  ;;  %v41_v32 = vld [vmem:[#allocation2 + $0x8] sm:$0xff]  ;;  %v42_v35 = vld [vmem:[#allocation2 + $0x10] sm:$0xff] }
  0x29   :  { %182 = vmatpush3.msra.mxu0 %v54_v11  ;;  %230 = vmatpush3.msra.mxu1 %v54_v11  ;;  %v40_v34 = vld [vmem:[#allocation2] sm:$0xff] }
  0x2a   :  { %183 = vmatprep.subr.mxu0 %v69_v12  ;;  %215 = vmatprep.subr.mxu1 %v69_v12 }
  0x2b   :  { %184 = vmatpush3.msra.mxu0 %v53_v13  ;;  %231 = vmatpush3.msra.mxu1 %v53_v13 }
  0x2c   :  { %185 = vmatprep.subr.mxu0 %v68_v14  ;;  %216 = vmatprep.subr.mxu1 %v68_v14 }
  0x2d   :  { %186 = vmatpush3.msra.mxu0 %v52_v15  ;;  %232 = vmatpush3.msra.mxu1 %v52_v15 }
  0x2e   :  { %187 = vmatprep.subr.mxu0 %v67_v16  ;;  %217 = vmatprep.subr.mxu1 %v67_v16 }
  0x2f   :  { %188 = vmatpush3.msra.mxu0 %v51_v17  ;;  %233 = vmatpush3.msra.mxu1 %v51_v17 }
  0x30   :  { %189 = vmatprep.subr.mxu0 %v66_v18  ;;  %218 = vmatprep.subr.mxu1 %v66_v18 }
  0x31   :  { %190 = vmatpush3.msra.mxu0 %v50_v19  ;;  %234 = vmatpush3.msra.mxu1 %v50_v19 }
  0x32   :  { %191 = vmatprep.subr.mxu0 %v65_v20  ;;  %219 = vmatprep.subr.mxu1 %v65_v20 }
  0x33   :  { %192 = vmatpush3.msra.mxu0 %v49_v21  ;;  %235 = vmatpush3.msra.mxu1 %v49_v21 }
  0x34   :  { %193 = vmatprep.subr.mxu0 %v64_v22  ;;  %220 = vmatprep.subr.mxu1 %v64_v22 }
  0x35   :  { %194 = vmatpush3.msra.mxu0 %v48_v23  ;;  %236 = vmatpush3.msra.mxu1 %v48_v23 }
  0x36   :  { %195 = vmatprep.subr.mxu0 %v63_v24  ;;  %221 = vmatprep.subr.mxu1 %v63_v24 }
  0x37   :  { %196 = vmatpush3.msra.mxu0 %v47_v25  ;;  %237 = vmatpush3.msra.mxu1 %v47_v25 }
  0x38   :  { %197 = vmatprep.subr.mxu0 %v62_v26  ;;  %222 = vmatprep.subr.mxu1 %v62_v26 }
  0x39   :  { %198 = vmatpush3.msra.mxu0 %v46_v27  ;;  %238 = vmatpush3.msra.mxu1 %v46_v27 }
  0x3a   :  { %199 = vmatprep.subr.mxu0 %v61_v28  ;;  %223 = vmatprep.subr.mxu1 %v61_v28 }
  0x3b   :  { %200 = vmatpush3.msra.mxu0 %v45_v29  ;;  %239 = vmatpush3.msra.mxu1 %v45_v29 }
  0x3c   :  { %201 = vmatprep.subr.mxu0 %v60_v30  ;;  %224 = vmatprep.subr.mxu1 %v60_v30 }
  0x3d   :  { %202 = vmatpush3.msra.mxu0 %v44_v31  ;;  %240 = vmatpush3.msra.mxu1 %v44_v31 }
  0x3e   :  { %140 = vmatprep.mubr.f32.mxu0 %v41_v32  ;;  %145 = vmatprep.mubr.f32.mxu1 %v43_v33 }
  0x3f   :  { %141 = vmatmul.mubr.f32.vlgmr.msra.gmra.mxu0 %v40_v34  ;;  %146 = vmatmul.mubr.f32.vlgmr.msra.gmra.mxu1 %v42_v35 }
  0xff   :  { %v203_v36 = vpop.f32.mrf.mxu0  ;;  %v206_v37 = vpop.f32.mrf.mxu1 }
 0x101   :  { %v204_v38 = vpop.f32.mrf.mxu0  ;;  %v207_v39 = vpop.f32.mrf.mxu1 }
 0x102   :  { %v205_v40 = vadd.f32 %v204_v38, %v203_v36  ;;  %v208_v41 = vadd.f32 %v207_v39, %v206_v37 }
 0x104   :  { %151 = vst [vmem:[#allocation7] sm:$0xff] %v205_v40  ;;  %152 = vst [vmem:[#allocation7 + $0x8] sm:$0xff] %v208_v41 }
 0x105   :  { %299 = shalt.err (!%p296_p0)
}
 0x106   :  { %164 = dma.vmem_to_hbm [thread:$0]  %s159_s1, 256, %s353_s2, [#allocation4], %s318_s19, %s318_s19, %s319_s20  }
 0x107   :  { %312 = dma.done.wait [#allocation4], 256  }
 0x108   :  { %313 = vsyncadd [#allocation4], 4294967040 }
 0x109   :  { %168 = vsyncpa [#allocation3], 1 }
 0x10a   :  { %169 = vsyncpa [#allocation6], 1 }
 0x10b   :  { %170 = vsyncpa [#allocation4], 1 }

</bundles_post_ra>
